<compile_context>
chip_gen: v6e
topology: v6e:2x2x1
jax: 0.10.0
libtpu: 0.0.40
codegen_flags: <defaults>
</compile_context>

<pallas_src>
import jax
import jax.numpy as jnp
from jax.experimental import pallas as pl
from jax.experimental.pallas import tpu as pltpu


def _round_up(x: int, m: int) -> int:
    return ((x + m - 1) // m) * m


def _auc_pair_kernel(pos_ref, neg_ref, out_ref, acc_ref):
    """One (TI x TJ) tile of the pairwise comparison matrix.

    pos_ref: (TI, 1)    sigmoid(pred) for positives, -inf sentinel elsewhere
    neg_ref: (1, TJ)    sigmoid(pred) for negatives, +inf sentinel elsewhere
    out_ref: (1,1,128)  per-i-tile lane partials of 2x win credit
    acc_ref: (TI, 128)  f32 accumulator across the j ("arbitrary") grid axis
    """
    j = pl.program_id(1)

    @pl.when(j == 0)
    def _():
        acc_ref[...] = jnp.zeros_like(acc_ref)

    ti = pos_ref.shape[0]
    tj = neg_ref.shape[1]
    n_chunks = tj // 128

    # Hoisted lane-broadcast of the positives column (done once per tile, not
    # once per chunk -- JAX does not CSE broadcast_in_dim).
    p_b = jnp.broadcast_to(pos_ref[...], (ti, 128))

    # Chunked VPU accumulate: pure compares + adds, no MXU, no (TI,TJ) score
    # materialization, no ones constant.  Static Python loop == fully unrolled
    # loop with compile-time-constant 128-aligned chunk offsets, giving the
    # LLO scheduler full visibility and unmasked vector loads.
    for c in range(n_chunks):
        nc = neg_ref[:, pl.ds(c * 128, 128)]             # (1, 128)
        gt = (p_b > nc).astype(jnp.float32)
        ge = (p_b >= nc).astype(jnp.float32)             # win=2, tie=1, loss=0
        acc_ref[...] += gt + ge

    @pl.when(j == pl.num_programs(1) - 1)
    def _():
        # Sublane reduce only; lanes are NOT identical (each lane holds the
        # partial for its lane offset within the 128-wide chunks), so the
        # wrapper sums over all 128 lanes of the lane-dense output.
        out_ref[...] = jnp.sum(acc_ref[...], axis=0,
                               keepdims=True).reshape(1, 1, 128)


def auc_metric(pred: jax.Array, target: jax.Array, *,
               ti: int = 512, tj: int = 4096) -> jax.Array:
    """AUC of sigmoid(pred) vs binary target. Returns a scalar float32."""
    pred_flat = pred.reshape(-1).astype(jnp.float32)
    tgt_flat = target.reshape(-1)
    n = pred_flat.shape[0]

    # Hoisted out of the kernel: sigmoid (must stay: f32 saturation creates the
    # same ties sklearn-on-probabilities sees), class masks, class counts.
    prob = jax.nn.sigmoid(pred_flat)
    pos_mask = tgt_flat == 1
    neg_mask = tgt_flat == 0
    n_pos = jnp.sum(pos_mask).astype(jnp.float32)
    n_neg = jnp.sum(neg_mask).astype(jnp.float32)

    n8 = _round_up(n, 8)
    n128 = _round_up(n, 128)

    ti_eff = min(ti, n8)
    # v7x megacore: make sure the "parallel" i axis has >= 2 tiles whenever n
    # allows, so both TensorCores get work (harmless on single-TC v5e/v6e).
    if n8 >= 16 and ti_eff >= n8:
        ti_eff = _round_up((n8 + 1) // 2, 8)
    tj_eff = min(tj, n128)

    n_i = _round_up(n, ti_eff)
    n_j = _round_up(n, tj_eff)
    num_i = n_i // ti_eff
    num_j = n_j // tj_eff

    # Sentinel encoding folds class masks + padding into the operands.
    pos_col = jnp.pad(jnp.where(pos_mask, prob, -jnp.inf),
                      (0, n_i - n), constant_values=-jnp.inf).reshape(n_i, 1)
    neg_row = jnp.pad(jnp.where(neg_mask, prob, jnp.inf),
                      (0, n_j - n), constant_values=jnp.inf).reshape(1, n_j)

    partials = pl.pallas_call(
        _auc_pair_kernel,
        out_shape=jax.ShapeDtypeStruct((num_i, 1, 128), jnp.float32),
        grid_spec=pltpu.PrefetchScalarGridSpec(
            num_scalar_prefetch=0,
            grid=(num_i, num_j),
            in_specs=[
                pl.BlockSpec((ti_eff, 1), lambda i, j: (i, 0)),   # positives col
                pl.BlockSpec((1, tj_eff), lambda i, j: (0, j)),   # negatives row
            ],
            out_specs=pl.BlockSpec((1, 1, 128), lambda i, j: (i, 0, 0)),
            scratch_shapes=[pltpu.VMEM((ti_eff, 128), jnp.float32)],
        ),
        compiler_params=pltpu.CompilerParams(
            dimension_semantics=("parallel", "arbitrary")),
    )(pos_col, neg_row)

    wins2 = jnp.sum(partials)                    # 2x total win credit (all lanes)
    denom = n_pos * n_neg
    # sklearn raises ValueError (module returns 0.5) when only one class exists.
    return jnp.where(denom > 0.0, wins2 / (2.0 * denom), 0.5)


def _auc_reference(pred, target):
    """Pure-JAX pairwise AUC reference (same tie handling as sklearn)."""
    p = jax.nn.sigmoid(pred.reshape(-1).astype(jnp.float32))
    t = target.reshape(-1).astype(jnp.float32)
    pos = (t == 1.0).astype(jnp.float32)
    neg = (t == 0.0).astype(jnp.float32)
    gt = (p[:, None] > p[None, :]).astype(jnp.float32)
    eq = (p[:, None] == p[None, :]).astype(jnp.float32)
    wins = jnp.sum(pos[:, None] * neg[None, :] * (gt + 0.5 * eq))
    denom = jnp.sum(pos) * jnp.sum(neg)
    return jnp.where(denom > 0.0, wins / denom, 0.5)


if __name__ == "__main__":
    key = jax.random.PRNGKey(0)
    k1, k2 = jax.random.split(key)

    # CTR-style inputs: batch of 2x128 logits and binary labels.
    pred = jax.random.normal(k1, (2, 128), dtype=jnp.float32)             # logits
    target = (jax.random.uniform(k2, (2, 128)) > 0.5).astype(jnp.int32)   # 0/1

    auc = auc_metric(pred, target)
    jax.block_until_ready(auc)

    ref = _auc_reference(pred, target)
    assert abs(float(auc) - float(ref)) < 1e-5, (float(auc), float(ref))

    # Degenerate single-class fallback path (sklearn ValueError -> 0.5).
    auc_one_class = auc_metric(pred, jnp.ones_like(target))
    jax.block_until_ready(auc_one_class)
    assert abs(float(auc_one_class) - 0.5) < 1e-6

    print("KERNEL_OK")
</pallas_src>

<mosaic_0001>
module attributes {stable_mosaic.version = 11 : i64} {
  func.func @_auc_pair_kernel(%arg0: i32, %arg1: i32, %arg2: memref<128x1xf32, #tpu.memory_space<vmem>>, %arg3: memref<1x256xf32, #tpu.memory_space<vmem>>, %arg4: memref<1x1x128xf32, #tpu.memory_space<vmem>>, %arg5: memref<128x128xf32, #tpu.memory_space<vmem>>) attributes {dimension_semantics = [#tpu.dimension_semantics<parallel>, #tpu.dimension_semantics<arbitrary>], iteration_bounds = array<i64: 2, 1>, scalar_prefetch = 0 : i64, scratch_operands = 1 : i64, tpu.core_type = #tpu.core_type<tc>, window_params = [{transform_indices = @transform_0, window_bounds = array<i64: 128, 1>}, {transform_indices = @transform_1, window_bounds = array<i64: 1, 256>}, {transform_indices = @transform_2, window_bounds = array<i64: 1, 1, 128>}]} {
    %c0_i32 = arith.constant 0 : i32
    %0 = arith.cmpi eq, %arg1, %c0_i32 : i32
    %1 = arith.extui %0 : i1 to i32
    %c0_i32_0 = arith.constant 0 : i32
    %2 = arith.cmpi ne, %1, %c0_i32_0 : i32
    scf.if %2 {
      %cst = arith.constant 0.000000e+00 : f32
      %35 = vector.broadcast %cst : f32 to vector<128x128xf32>
      %c0_15 = arith.constant 0 : index
      %c0_16 = arith.constant 0 : index
      %36 = vector.load %arg5[%c0_15, %c0_16] : memref<128x128xf32, #tpu.memory_space<vmem>>, vector<128x128xf32>
      tpu.vector_store %arg5[%c0_15, %c0_16], %35 {strides = array<i32>} : memref<128x128xf32, #tpu.memory_space<vmem>>, vector<128x128xf32>,
    } else {
    }
    %c0 = arith.constant 0 : index
    %c0_1 = arith.constant 0 : index
    %3 = vector.load %arg2[%c0, %c0_1] : memref<128x1xf32, #tpu.memory_space<vmem>>, vector<128x1xf32>
    %4 = vector.shape_cast %3 : vector<128x1xf32> to vector<128x1xf32>
    %5 = vector.broadcast %4 : vector<128x1xf32> to vector<128x128xf32>
    %c0_2 = arith.constant 0 : index
    %c0_3 = arith.constant 0 : index
    %6 = vector.load %arg3[%c0_2, %c0_3] : memref<1x256xf32, #tpu.memory_space<vmem>>, vector<1x128xf32>
    %7 = vector.broadcast %6 : vector<1x128xf32> to vector<128x128xf32>
    %8 = arith.cmpf ogt, %5, %7 : vector<128x128xf32>
    %9 = arith.extui %8 : vector<128x128xi1> to vector<128x128xi32>
    %10 = arith.sitofp %9 : vector<128x128xi32> to vector<128x128xf32>
    %11 = vector.broadcast %6 : vector<1x128xf32> to vector<128x128xf32>
    %12 = arith.cmpf oge, %5, %11 : vector<128x128xf32>
    %13 = arith.extui %12 : vector<128x128xi1> to vector<128x128xi32>
    %14 = arith.sitofp %13 : vector<128x128xi32> to vector<128x128xf32>
    %c0_4 = arith.constant 0 : index
    %c0_5 = arith.constant 0 : index
    %15 = vector.load %arg5[%c0_4, %c0_5] : memref<128x128xf32, #tpu.memory_space<vmem>>, vector<128x128xf32>
    %16 = arith.addf %10, %14 : vector<128x128xf32>
    %17 = arith.addf %15, %16 : vector<128x128xf32>
    %c0_6 = arith.constant 0 : index
    %c0_7 = arith.constant 0 : index
    %18 = vector.load %arg5[%c0_6, %c0_7] : memref<128x128xf32, #tpu.memory_space<vmem>>, vector<128x128xf32>
    tpu.vector_store %arg5[%c0_6, %c0_7], %17 {strides = array<i32>} : memref<128x128xf32, #tpu.memory_space<vmem>>, vector<128x128xf32>,
    %c0_8 = arith.constant 0 : index
    %c128 = arith.constant 128 : index
    %19 = vector.load %arg3[%c0_8, %c128] : memref<1x256xf32, #tpu.memory_space<vmem>>, vector<1x128xf32>
    %20 = vector.broadcast %19 : vector<1x128xf32> to vector<128x128xf32>
    %21 = arith.cmpf ogt, %5, %20 : vector<128x128xf32>
    %22 = arith.extui %21 : vector<128x128xi1> to vector<128x128xi32>
    %23 = arith.sitofp %22 : vector<128x128xi32> to vector<128x128xf32>
    %24 = vector.broadcast %19 : vector<1x128xf32> to vector<128x128xf32>
    %25 = arith.cmpf oge, %5, %24 : vector<128x128xf32>
    %26 = arith.extui %25 : vector<128x128xi1> to vector<128x128xi32>
    %27 = arith.sitofp %26 : vector<128x128xi32> to vector<128x128xf32>
    %c0_9 = arith.constant 0 : index
    %c0_10 = arith.constant 0 : index
    %28 = vector.load %arg5[%c0_9, %c0_10] : memref<128x128xf32, #tpu.memory_space<vmem>>, vector<128x128xf32>
    %29 = arith.addf %23, %27 : vector<128x128xf32>
    %30 = arith.addf %28, %29 : vector<128x128xf32>
    %c0_11 = arith.constant 0 : index
    %c0_12 = arith.constant 0 : index
    %31 = vector.load %arg5[%c0_11, %c0_12] : memref<128x128xf32, #tpu.memory_space<vmem>>, vector<128x128xf32>
    tpu.vector_store %arg5[%c0_11, %c0_12], %30 {strides = array<i32>} : memref<128x128xf32, #tpu.memory_space<vmem>>, vector<128x128xf32>,
    %c0_i32_13 = arith.constant 0 : i32
    %32 = arith.cmpi eq, %arg1, %c0_i32_13 : i32
    %33 = arith.extui %32 : i1 to i32
    %c0_i32_14 = arith.constant 0 : i32
    %34 = arith.cmpi ne, %33, %c0_i32_14 : i32
    scf.if %34 {
      %c0_15 = arith.constant 0 : index
      %c0_16 = arith.constant 0 : index
      %35 = vector.load %arg5[%c0_15, %c0_16] : memref<128x128xf32, #tpu.memory_space<vmem>>, vector<128x128xf32>
      %cst = arith.constant dense<0.000000e+00> : vector<128xf32>
      %36 = vector.multi_reduction <add>, %35, %cst [0] : vector<128x128xf32> to vector<128xf32>
      %37 = vector.shape_cast %36 : vector<128xf32> to vector<1x128xf32>
      %38 = vector.shape_cast %37 : vector<1x128xf32> to vector<1x1x128xf32>
      %c0_17 = arith.constant 0 : index
      %c0_18 = arith.constant 0 : index
      %c0_19 = arith.constant 0 : index
      %39 = vector.load %arg4[%c0_17, %c0_18, %c0_19] : memref<1x1x128xf32, #tpu.memory_space<vmem>>, vector<1x1x128xf32>
      tpu.vector_store %arg4[%c0_17, %c0_18, %c0_19], %38 {strides = array<i32>} : memref<1x1x128xf32, #tpu.memory_space<vmem>>, vector<1x1x128xf32>,
    } else {
    }
    return
  }
  func.func @transform_0(%arg0: i32, %arg1: i32) -> (i32, i32) {
    %c0_i32 = arith.constant 0 : i32
    %c0_i32_0 = arith.constant 0 : i32
    return %arg0, %c0_i32 : i32, i32
  }
  func.func @transform_1(%arg0: i32, %arg1: i32) -> (i32, i32) {
    %c0_i32 = arith.constant 0 : i32
    %c0_i32_0 = arith.constant 0 : i32
    return %c0_i32, %arg1 : i32, i32
  }
  func.func @transform_2(%arg0: i32, %arg1: i32) -> (i32, i32, i32) {
    %c0_i32 = arith.constant 0 : i32
    %c0_i32_0 = arith.constant 0 : i32
    %c0_i32_1 = arith.constant 0 : i32
    return %arg0, %c0_i32, %c0_i32_0 : i32, i32, i32
  }
}

</mosaic_0001>

<bundles_post_ra>
// kernel: tpu_custom_call.1
= control target key start
LH: loop header
LB: loop body
LE: loop exit
PB: predicated region body
PF: predicated region fallthrough
CT: control target
= control target key end

     0   :  { %7 = vsyncpa [#allocation4], 0  ;;  %s1222_s0 = inlined_call_operand.vmem [shape: f32[256,1], index: 0, kind: input, shape index: {}]   ;;  %s1223_s1 = inlined_call_operand.vmem [shape: f32[1,256], index: 1, kind: input, shape index: {}]   ;;  %s1224_s2 = inlined_call_operand.hbm [shape: f32[2,1,128], index: 2, kind: output, shape index: {}]  }
   0x1   :  { %9 = vsyncpa [#allocation4 + $0x1], 0  ;;  %s985_s9 = smov 0   ;;  %s987_s10 = smov 0  }
   0x2   :  { %s989_s11 = smov 0   ;;  %s991_s12 = smov 0  }
   0x3   :  { %s993_s13 = smov 0   ;;  %s995_s14 = smov 0  }
   0x4 LB: > { %s753_s15 = sadd.s32 4294967295, %s965_s14   ;;  %s754_s16 = sadd.s32 4294967294, %s965_s14   ;;  %s965_s14 = sphi %s995_s14, %s15_s14   ;;  %s961_s13 = sphi %s993_s13, %s1231_s13   ;;  %s957_s12 = sphi %s991_s12, %s1230_s12   ;;  %s953_s11 = sphi %s989_s11, %s1229_s11   ;;  %s949_s10 = sphi %s987_s10, %s1228_s10   ;;  %s945_s9 = sphi %s985_s9, %s1227_s9  }
   0x5   : > { %s27_s17 = sadd.s32 1, %s961_s13  ;;  %s86_s18 = sadd.s32 1, %s953_s11 }
   0x6   : > { %p29_p0 = scmp.ge.s32.totalorder %s27_s17, 2  ;;  %p96_p1 = scmp.ne.s32.totalorder %s953_s11, %s949_s10 }
   0x7   : > { %p97_p2 = scmp.eq.s32.totalorder %s753_s15, 1  ;;  %p102_p3 = scmp.ne.s32.totalorder %s949_s10, %s945_s9 }
   0x8   : > { %s1233_s17 = smov (%p29_p0, %s27_s17), 0  ;;  %p103_p5 = scmp.eq.s32.totalorder %s754_s16, 1 }
   0x9   : > { %p1023_p4 = por %p97_p2, %p96_p1  ;;  %s83_s20 = ssub.s32 %s961_s13, %s1233_s17 }
   0xa   : > { %p758_p6 = scmp.ge.s32.totalorder %s965_s14, 1  ;;  %p84_p7 = scmp.eq.s32.totalorder %s83_s20, 0 }
   0xb   : > { %p1030_p8 = por %p103_p5, %p102_p3  ;;  %p138_p9 = scmp.lt.s32.totalorder %s965_s14, 3 }
   0xc   : > { %s1036_s22 = scalar_select %p84_p7, %s953_s11, %s86_s18  }
   0xd   : > { %p139_p10 = pnand %p758_p6, %p138_p9 }
   0xe   : > { %s1038_s23 = sshll.u32 (!%p139_p10), %s957_s12, 4  ;;  %s161_s5 = sand.u32 (!%p139_p10), 1, %s949_s10  }
   0xf   : > { %142 = sbr.rel (%p139_p10) target bundleno = 228 (0xe4), region = 28  ;;  %p164_p11 = scmp.lt.s32.totalorder (!%p139_p10), %s1038_s23, 31 }
  0x10   : > { %s162_s6 = scalar_lea.vmem (!%p139_p10), [#allocation3], %s161_s5  ;;  %s676_s15 = scalar_lea.hbm (!%p139_p10), %s1224_s2, %s1038_s23 }
  0x11   : > { %s678_s7 = sshll.u32 (!%p139_p10), %s162_s6, 4  ;;  %s666_s16 = scalar_lea.sflag (!%p139_p10), [#allocation4], %s161_s5  ;;  %s679_s7 = int_to_ptr.vmem [resolvable:$true] %s678_s7 }
  0x12   : > { %s889_s18 = scalar_lea.vmem (!%p139_p10), %s679_s7, 16  ;;  %s969_s20 = smov (!%p139_p10), [#allocation3]  }
  0x13   : > { %p890_p12 = scmp.ne.s32.totalorder (!%p139_p10), %s679_s7, %s889_s18 }
  0x14   : > { %v967_v0 = vmov 0   ;;  %s165_s24 = scalar_select %p164_p11, %s1038_s23, 31  ;;  %v1048_v17 = vld [vmem:[%s1223_s1] ss:$0 sm:$0xff]  ;;  %v1053_v18 = vld [vmem:[%s1223_s1 + $0x1] ss:$0 sm:$0xff] }
  0x15   : > { %888 = vset.pattern.permute.xlu1 %v967_v0  ;;  %887 = vset.pattern.permute.xlu0 %v967_v0  ;;  %v968_v21 = vmov 0.0   ;;  %p891_p13 = pnand %p890_p12, %p1023_p4 }
  0x16   : > { %s760_s25 = sshll.u32 %s165_s24, 3  ;;  %s893_s24 = sshll.u32 %s969_s20, 4  ;;  %s894_s24 = int_to_ptr.vmem [resolvable:$false] %s893_s24 }
  0x17   : > { %s167_s28 = scalar_lea.vmem %s1222_s0, %s760_s25  ;;  %p892_p0 = pneg %p891_p13 }
  0x18   : > { %v196_v1 = vld [vmem:[%s167_s28 + $0x10] sm:$0xff]  ;;  %v194_v2 = vld [vmem:[%s167_s28] sm:$0xff]  ;;  %v197_v3 = vld [vmem:[%s167_s28 + $0x18] sm:$0xff]  ;;  %s895_s25 = scalar_lea.vmem %s894_s24, 32  ;;  %p896_p1 = scmp.lt.s32.totalorder %s679_s7, %s894_s24 }
  0x19   : > { %222 = vperm.xlu1 %888, %v196_v1   ;;  %212 = vperm.xlu0 %887, %v194_v2   ;;  %v195_v4 = vld [vmem:[%s167_s28 + $0x8] sm:$0xff]  ;;  %v198_v6 = vld [vmem:[%s167_s28 + $0x20] sm:$0xff]  ;;  %v201_v7 = vld [vmem:[%s167_s28 + $0x38] sm:$0xff]  ;;  %p897_p2 = scmp.lt.s32.totalorder %s895_s25, %s889_s18 }
  0x1a   : > { %v199_v5 = vld [vmem:[%s167_s28 + $0x28] sm:$0xff]  ;;  %v200_v8 = vld [vmem:[%s167_s28 + $0x30] sm:$0xff]  ;;  %v202_v10 = vld [vmem:[%s167_s28 + $0x40] sm:$0xff] }
  0x1b   : > { %v203_v9 = vld [vmem:[%s167_s28 + $0x48] sm:$0xff]  ;;  %v205_v11 = vld [vmem:[%s167_s28 + $0x58] sm:$0xff]  ;;  %v204_v12 = vld [vmem:[%s167_s28 + $0x50] sm:$0xff]  ;;  %p898_p3 = por %p897_p2, %p896_p1 }
  0x1c   : > { %v207_v13 = vld [vmem:[%s167_s28 + $0x68] sm:$0xff]  ;;  %v206_v14 = vld [vmem:[%s167_s28 + $0x60] sm:$0xff]  ;;  %v209_v15 = vld [vmem:[%s167_s28 + $0x78] sm:$0xff] }
  0x1d   : > { %227 = vperm.xlu1 %888, %v197_v3   ;;  %217 = vperm.xlu0 %887, %v195_v4   ;;  %v208_v16 = vld [vmem:[%s167_s28 + $0x70] sm:$0xff]  ;;  %p899_p5 = pnand %p898_p3, %p892_p0 }
  0x21   : > { %237 = vperm.xlu1 %888, %v199_v5   ;;  %232 = vperm.xlu0 %887, %v198_v6  }
  0x25   : > { %247 = vperm.xlu1 %888, %v201_v7   ;;  %242 = vperm.xlu0 %887, %v200_v8  }
  0x29   : > { %257 = vperm.xlu1 %888, %v203_v9   ;;  %252 = vperm.xlu0 %887, %v202_v10  }
  0x2d   : > { %267 = vperm.xlu1 %888, %v205_v11   ;;  %262 = vperm.xlu0 %887, %v204_v12  }
  0x31   : > { %277 = vperm.xlu1 %888, %v207_v13   ;;  %272 = vperm.xlu0 %887, %v206_v14  }
  0x35   : > { %287 = vperm.xlu1 %888, %v209_v15   ;;  %282 = vperm.xlu0 %887, %v208_v16  }
  0x94   : > { %v223_v19 = vpop.permute.xlu1 %222  ;;  %v213_v20 = vpop.permute.xlu0 %212 }
  0x95   : > { %vm299_vm0 = vcmp.gt.f32.partialorder %v223_v19, %v1048_v17  ;;  %vm347_vm1 = vcmp.ge.f32.partialorder %v223_v19, %v1048_v17  ;;  %vm466_vm2 = vcmp.gt.f32.partialorder %v223_v19, %v1053_v18  ;;  %vm514_vm3 = vcmp.ge.f32.partialorder %v223_v19, %v1053_v18 }
  0x96   : > { %v764_v22 = vsel %vm299_vm0, 1.0, %v968_v21  ;;  %v780_v23 = vsel %vm347_vm1, 1.0, %v968_v21  ;;  %v797_v24 = vsel %vm466_vm2, 1.0, %v968_v21  ;;  %v813_v25 = vsel %vm514_vm3, 1.0, %v968_v21 }
  0x97   : > { %v411_v26 = vadd.f32 %v780_v23, %v764_v22  ;;  %v578_v27 = vadd.f32 %v813_v25, %v797_v24  ;;  %vm297_vm4 = vcmp.gt.f32.partialorder %v213_v20, %v1048_v17  ;;  %vm345_vm5 = vcmp.ge.f32.partialorder %v213_v20, %v1048_v17 }
  0x98   : > { %v762_v28 = vsel %vm297_vm4, 1.0, %v968_v21  ;;  %v778_v29 = vsel %vm345_vm5, 1.0, %v968_v21  ;;  %vm464_vm6 = vcmp.gt.f32.partialorder %v213_v20, %v1053_v18  ;;  %vm512_vm7 = vcmp.ge.f32.partialorder %v213_v20, %v1053_v18  ;;  %v228_v30 = vpop.permute.xlu1 %227  ;;  %v218_v31 = vpop.permute.xlu0 %217 }
  0x99   : > { %v594_v32 = vadd.f32 %v578_v27, %v411_v26  ;;  %v409_v33 = vadd.f32 %v778_v29, %v762_v28  ;;  %v795_v34 = vsel %vm464_vm6, 1.0, %v968_v21  ;;  %v811_v35 = vsel %vm512_vm7, 1.0, %v968_v21 }
  0x9a   : > { %v576_v36 = vadd.f32 %v811_v35, %v795_v34  ;;  %vm300_vm8 = vcmp.gt.f32.partialorder %v228_v30, %v1048_v17  ;;  %vm348_vm9 = vcmp.ge.f32.partialorder %v228_v30, %v1048_v17  ;;  %vm467_vm10 = vcmp.gt.f32.partialorder %v228_v30, %v1053_v18 }
  0x9b   : > { %v765_v37 = vsel %vm300_vm8, 1.0, %v968_v21  ;;  %v781_v38 = vsel %vm348_vm9, 1.0, %v968_v21  ;;  %v798_v39 = vsel %vm467_vm10, 1.0, %v968_v21  ;;  %vm515_vm11 = vcmp.ge.f32.partialorder %v228_v30, %v1053_v18 }
  0x9c   : > { %v592_v40 = vadd.f32 %v576_v36, %v409_v33  ;;  %v412_v41 = vadd.f32 %v781_v38, %v765_v37  ;;  %v814_v42 = vsel %vm515_vm11, 1.0, %v968_v21  ;;  %vm298_vm12 = vcmp.gt.f32.partialorder %v218_v31, %v1048_v17  ;;  %v238_v43 = vpop.permute.xlu1 %237  ;;  %v233_v48 = vpop.permute.xlu0 %232 }
  0x9d   : > { %v579_v44 = vadd.f32 %v814_v42, %v798_v39  ;;  %v763_v45 = vsel %vm298_vm12, 1.0, %v968_v21  ;;  %vm346_vm13 = vcmp.ge.f32.partialorder %v218_v31, %v1048_v17  ;;  %vm465_vm14 = vcmp.gt.f32.partialorder %v218_v31, %v1053_v18 }
  0x9e   : > { %v779_v46 = vsel %vm346_vm13, 1.0, %v968_v21  ;;  %v796_v47 = vsel %vm465_vm14, 1.0, %v968_v21  ;;  %vm513_vm15 = vcmp.ge.f32.partialorder %v218_v31, %v1053_v18  ;;  %vm302_vm0 = vcmp.gt.f32.partialorder %v238_v43, %v1048_v17 }
  0x9f   : > { %v595_v49 = vadd.f32 %v579_v44, %v412_v41  ;;  %v410_v50 = vadd.f32 %v779_v46, %v763_v45  ;;  %v812_v51 = vsel %vm513_vm15, 1.0, %v968_v21  ;;  %v767_v52 = vsel %vm302_vm0, 1.0, %v968_v21 }
  0xa0   : > { %v577_v53 = vadd.f32 %v812_v51, %v796_v47  ;;  %vm350_vm1 = vcmp.ge.f32.partialorder %v238_v43, %v1048_v17  ;;  %vm469_vm2 = vcmp.gt.f32.partialorder %v238_v43, %v1053_v18  ;;  %vm517_vm3 = vcmp.ge.f32.partialorder %v238_v43, %v1053_v18  ;;  %v248_v54 = vpop.permute.xlu1 %247  ;;  %v243_v2 = vpop.permute.xlu0 %242 }
  0xa1   : > { %v783_v55 = vsel %vm350_vm1, 1.0, %v968_v21  ;;  %v800_v56 = vsel %vm469_vm2, 1.0, %v968_v21  ;;  %v816_v57 = vsel %vm517_vm3, 1.0, %v968_v21  ;;  %vm301_vm4 = vcmp.gt.f32.partialorder %v233_v48, %v1048_v17 }
  0xa2   : > { %v593_v58 = vadd.f32 %v577_v53, %v410_v50  ;;  %v414_v59 = vadd.f32 %v783_v55, %v767_v52  ;;  %v581_v60 = vadd.f32 %v816_v57, %v800_v56  ;;  %v766_v61 = vsel %vm301_vm4, 1.0, %v968_v21 }
  0xa3   : > { %vm349_vm5 = vcmp.ge.f32.partialorder %v233_v48, %v1048_v17  ;;  %vm468_vm6 = vcmp.gt.f32.partialorder %v233_v48, %v1053_v18  ;;  %vm516_vm7 = vcmp.ge.f32.partialorder %v233_v48, %v1053_v18  ;;  %vm304_vm8 = vcmp.gt.f32.partialorder %v248_v54, %v1048_v17 }
  0xa4   : > { %v643_v62 = vadd.f32 %v593_v58, %v592_v40  ;;  %v597_v63 = vadd.f32 %v581_v60, %v414_v59  ;;  %v782_v0 = vsel %vm349_vm5, 1.0, %v968_v21  ;;  %v799_v1 = vsel %vm468_vm6, 1.0, %v968_v21  ;;  %v258_v11 = vpop.permute.xlu1 %257  ;;  %v253_v24 = vpop.permute.xlu0 %252 }
  0xa5   : > { %v413_v3 = vadd.f32 %v782_v0, %v766_v61  ;;  %v815_v4 = vsel %vm516_vm7, 1.0, %v968_v21  ;;  %v769_v5 = vsel %vm304_vm8, 1.0, %v968_v21  ;;  %vm352_vm9 = vcmp.ge.f32.partialorder %v248_v54, %v1048_v17 }
  0xa6   : > { %v644_v6 = vadd.f32 %v643_v62, %v594_v32  ;;  %v580_v7 = vadd.f32 %v815_v4, %v799_v1  ;;  %v785_v8 = vsel %vm352_vm9, 1.0, %v968_v21  ;;  %vm471_vm10 = vcmp.gt.f32.partialorder %v248_v54, %v1053_v18 }
  0xa7   : > { %v416_v9 = vadd.f32 %v785_v8, %v769_v5  ;;  %v802_v10 = vsel %vm471_vm10, 1.0, %v968_v21  ;;  %vm519_vm11 = vcmp.ge.f32.partialorder %v248_v54, %v1053_v18  ;;  %vm303_vm12 = vcmp.gt.f32.partialorder %v243_v2, %v1048_v17 }
  0xa8   : > { %v645_v12 = vadd.f32 %v644_v6, %v595_v49  ;;  %v596_v13 = vadd.f32 %v580_v7, %v413_v3  ;;  %v818_v14 = vsel %vm519_vm11, 1.0, %v968_v21  ;;  %v768_v15 = vsel %vm303_vm12, 1.0, %v968_v21  ;;  %v268_v33 = vpop.permute.xlu1 %267  ;;  %v263_v41 = vpop.permute.xlu0 %262 }
  0xa9   : > { %v583_v16 = vadd.f32 %v818_v14, %v802_v10  ;;  %vm351_vm13 = vcmp.ge.f32.partialorder %v243_v2, %v1048_v17  ;;  %vm470_vm14 = vcmp.gt.f32.partialorder %v243_v2, %v1053_v18  ;;  %vm518_vm15 = vcmp.ge.f32.partialorder %v243_v2, %v1053_v18 }
  0xaa   : > { %v646_v19 = vadd.f32 %v645_v12, %v596_v13  ;;  %v784_v20 = vsel %vm351_vm13, 1.0, %v968_v21  ;;  %v801_v22 = vsel %vm470_vm14, 1.0, %v968_v21  ;;  %v817_v23 = vsel %vm518_vm15, 1.0, %v968_v21 }
  0xab   : > { %v599_v25 = vadd.f32 %v583_v16, %v416_v9  ;;  %v415_v26 = vadd.f32 %v784_v20, %v768_v15  ;;  %v582_v27 = vadd.f32 %v817_v23, %v801_v22  ;;  %vm306_vm0 = vcmp.gt.f32.partialorder %v258_v11, %v1048_v17 }
  0xac   : > { %v647_v28 = vadd.f32 %v646_v19, %v597_v63  ;;  %v771_v29 = vsel %vm306_vm0, 1.0, %v968_v21  ;;  %vm354_vm1 = vcmp.ge.f32.partialorder %v258_v11, %v1048_v17  ;;  %vm473_vm2 = vcmp.gt.f32.partialorder %v258_v11, %v1053_v18  ;;  %v278_v49 = vpop.permute.xlu1 %277  ;;  %v273_v59 = vpop.permute.xlu0 %272 }
  0xad   : > { %v598_v30 = vadd.f32 %v582_v27, %v415_v26  ;;  %v787_v31 = vsel %vm354_vm1, 1.0, %v968_v21  ;;  %v804_v32 = vsel %vm473_vm2, 1.0, %v968_v21  ;;  %vm521_vm3 = vcmp.ge.f32.partialorder %v258_v11, %v1053_v18 }
  0xae   : > { %v418_v34 = vadd.f32 %v787_v31, %v771_v29  ;;  %v820_v35 = vsel %vm521_vm3, 1.0, %v968_v21  ;;  %vm305_vm4 = vcmp.gt.f32.partialorder %v253_v24, %v1048_v17  ;;  %vm353_vm5 = vcmp.ge.f32.partialorder %v253_v24, %v1048_v17 }
  0xaf   : > { %v648_v36 = vadd.f32 %v647_v28, %v598_v30  ;;  %v585_v37 = vadd.f32 %v820_v35, %v804_v32  ;;  %v770_v38 = vsel %vm305_vm4, 1.0, %v968_v21  ;;  %v786_v39 = vsel %vm353_vm5, 1.0, %v968_v21 }
  0xb0   : > { %v417_v40 = vadd.f32 %v786_v39, %v770_v38  ;;  %vm472_vm6 = vcmp.gt.f32.partialorder %v253_v24, %v1053_v18  ;;  %vm520_vm7 = vcmp.ge.f32.partialorder %v253_v24, %v1053_v18  ;;  %vm308_vm8 = vcmp.gt.f32.partialorder %v268_v33, %v1048_v17  ;;  %v288_v3 = vpop.permute.xlu1 %287  ;;  %v283_v11 = vpop.permute.xlu0 %282 }
  0xb1   : > { %v649_v42 = vadd.f32 %v648_v36, %v599_v25  ;;  %v803_v43 = vsel %vm472_vm6, 1.0, %v968_v21  ;;  %v819_v44 = vsel %vm520_vm7, 1.0, %v968_v21  ;;  %v773_v46 = vsel %vm308_vm8, 1.0, %v968_v21 }
  0xb2   : > { %v584_v45 = vadd.f32 %v819_v44, %v803_v43  ;;  %vm356_vm9 = vcmp.ge.f32.partialorder %v268_v33, %v1048_v17  ;;  %vm475_vm10 = vcmp.gt.f32.partialorder %v268_v33, %v1053_v18  ;;  %v601_v47 = vadd.f32 %v585_v37, %v418_v34 }
  0xb3   : > { %v789_v48 = vsel %vm356_vm9, 1.0, %v968_v21  ;;  %vm523_vm11 = vcmp.ge.f32.partialorder %v268_v33, %v1053_v18  ;;  %vm307_vm12 = vcmp.gt.f32.partialorder %v263_v41, %v1048_v17  ;;  %v806_v51 = vsel %vm475_vm10, 1.0, %v968_v21 }
  0xb4   : > { %v600_v50 = vadd.f32 %v584_v45, %v417_v40  ;;  %v822_v52 = vsel %vm523_vm11, 1.0, %v968_v21  ;;  %v772_v53 = vsel %vm307_vm12, 1.0, %v968_v21  ;;  %v420_v54 = vadd.f32 %v789_v48, %v773_v46 }
  0xb5   : > { %vm355_vm13 = vcmp.ge.f32.partialorder %v263_v41, %v1048_v17  ;;  %vm474_vm14 = vcmp.gt.f32.partialorder %v263_v41, %v1053_v18  ;;  %vm522_vm15 = vcmp.ge.f32.partialorder %v263_v41, %v1053_v18  ;;  %v587_v60 = vadd.f32 %v822_v52, %v806_v51 }
  0xb6   : > { %v650_v55 = vadd.f32 %v649_v42, %v600_v50  ;;  %v788_v56 = vsel %vm355_vm13, 1.0, %v968_v21  ;;  %v805_v57 = vsel %vm474_vm14, 1.0, %v968_v21  ;;  %v821_v58 = vsel %vm522_vm15, 1.0, %v968_v21 }
  0xb7   : > { %v419_v61 = vadd.f32 %v788_v56, %v772_v53  ;;  %v586_v62 = vadd.f32 %v821_v58, %v805_v57  ;;  %vm310_vm0 = vcmp.gt.f32.partialorder %v278_v49, %v1048_v17  ;;  %vm358_vm1 = vcmp.ge.f32.partialorder %v278_v49, %v1048_v17 }
  0xb8   : > { %v651_v63 = vadd.f32 %v650_v55, %v601_v47  ;;  %vm477_vm2 = vcmp.gt.f32.partialorder %v278_v49, %v1053_v18  ;;  %v775_v1 = vsel %vm310_vm0, 1.0, %v968_v21  ;;  %v791_v2 = vsel %vm358_vm1, 1.0, %v968_v21 }
  0xb9   : > { %v602_v0 = vadd.f32 %v586_v62, %v419_v61  ;;  %vm525_vm3 = vcmp.ge.f32.partialorder %v278_v49, %v1053_v18  ;;  %v808_v4 = vsel %vm477_vm2, 1.0, %v968_v21  ;;  %vm309_vm4 = vcmp.gt.f32.partialorder %v273_v59, %v1048_v17 }
  0xba   : > { %v824_v5 = vsel %vm525_vm3, 1.0, %v968_v21  ;;  %vm357_vm5 = vcmp.ge.f32.partialorder %v273_v59, %v1048_v17  ;;  %v603_v6 = vadd.f32 %v587_v60, %v420_v54  ;;  %v774_v8 = vsel %vm309_vm4, 1.0, %v968_v21 }
  0xbb   : > { %v652_v7 = vadd.f32 %v651_v63, %v602_v0  ;;  %v790_v9 = vsel %vm357_vm5, 1.0, %v968_v21  ;;  %vm476_vm6 = vcmp.gt.f32.partialorder %v273_v59, %v1053_v18  ;;  %vm524_vm7 = vcmp.ge.f32.partialorder %v273_v59, %v1053_v18 }
  0xbc   : > { %v421_v10 = vadd.f32 %v790_v9, %v774_v8  ;;  %vm312_vm8 = vcmp.gt.f32.partialorder %v288_v3, %v1048_v17  ;;  %v422_v12 = vadd.f32 %v791_v2, %v775_v1  ;;  %v589_v13 = vadd.f32 %v824_v5, %v808_v4 }
  0xbd   : > { %v807_v14 = vsel %vm476_vm6, 1.0, %v968_v21  ;;  %v823_v15 = vsel %vm524_vm7, 1.0, %v968_v21  ;;  %v653_v16 = vadd.f32 %v652_v7, %v603_v6  ;;  %vm360_vm9 = vcmp.ge.f32.partialorder %v288_v3, %v1048_v17 }
  0xbe   : > { %v588_v19 = vadd.f32 %v823_v15, %v807_v14  ;;  %vm479_vm10 = vcmp.gt.f32.partialorder %v288_v3, %v1053_v18  ;;  %v777_v20 = vsel %vm312_vm8, 1.0, %v968_v21  ;;  %v793_v22 = vsel %vm360_vm9, 1.0, %v968_v21 }
  0xbf   : > { %vm527_vm11 = vcmp.ge.f32.partialorder %v288_v3, %v1053_v18  ;;  %vm311_vm12 = vcmp.gt.f32.partialorder %v283_v11, %v1048_v17  ;;  %v810_v24 = vsel %vm479_vm10, 1.0, %v968_v21  ;;  %v605_v27 = vadd.f32 %v589_v13, %v422_v12 }
  0xc0   : > { %v604_v23 = vadd.f32 %v588_v19, %v421_v10  ;;  %v826_v25 = vsel %vm527_vm11, 1.0, %v968_v21  ;;  %v776_v26 = vsel %vm311_vm12, 1.0, %v968_v21  ;;  %vm359_vm13 = vcmp.ge.f32.partialorder %v283_v11, %v1048_v17 }
  0xc1   : > { %vm478_vm14 = vcmp.gt.f32.partialorder %v283_v11, %v1053_v18  ;;  %vm526_vm15 = vcmp.ge.f32.partialorder %v283_v11, %v1053_v18  ;;  %v792_v29 = vsel %vm359_vm13, 1.0, %v968_v21  ;;  %v424_v32 = vadd.f32 %v793_v22, %v777_v20 }
  0xc2   : > { %v654_v28 = vadd.f32 %v653_v16, %v604_v23  ;;  %v809_v30 = vsel %vm478_vm14, 1.0, %v968_v21  ;;  %v825_v31 = vsel %vm526_vm15, 1.0, %v968_v21  ;;  %v591_v33 = vadd.f32 %v826_v25, %v810_v24 }
  0xc3   : > { %v423_v34 = vadd.f32 %v792_v29, %v776_v26  ;;  %v590_v35 = vadd.f32 %v825_v31, %v809_v30 }
  0xc4   : > { %v655_v36 = vadd.f32 %v654_v28, %v605_v27  ;;  %v607_v17 = vadd.f32 %v591_v33, %v424_v32 }
  0xc5   : > { %v606_v37 = vadd.f32 %v590_v35, %v423_v34 }
  0xc7   : > { %v656_v38 = vadd.f32 %v655_v36, %v606_v37 }
  0xc9   : > { %v657_v39 = vadd.f32 %v656_v38, %v607_v17 }
  0xcb   : > { %v658_v40 = vrot.slane %v657_v39, 4 }
  0xcd   : > { %v659_v18 = vadd.f32 %v658_v40, %v657_v39 }
  0xcf   : > { %v660_v41 = vrot.slane %v659_v18, 2 }
  0xd1   : > { %v661_v42 = vadd.f32 %v660_v41, %v659_v18 }
  0xd3   : > { %v662_v43 = vrot.slane %v661_v42, 1 }
  0xd5   : > { %v663_v21 = vadd.f32 %v662_v43, %v661_v42 }
  0xd7   : > { %664 = vst [vmem:[%s162_s6] sm:$0x1] %v663_v21 }
  0xd8   : > { %902 = shalt.err (!%p899_p5)
}
  0xd9   : > { %s903_s26 = scalar_lea.hbm %s676_s15, 16  ;;  %s907_s28 = scalar_lea.hbm %s1224_s2, 32 }
  0xda   : > { %p904_p6 = scmp.ne.s32.totalorder %s676_s15, %s903_s26  ;;  %p908_p10 = scmp.lt.s32.totalorder %s676_s15, %s1224_s2 }
  0xdb   : > { %p909_p11 = scmp.lt.s32.totalorder %s907_s28, %s903_s26 }
  0xdc   : > { %p905_p7 = pnand %p904_p6, %p1023_p4 }
  0xdd   : > { %p910_p12 = por %p909_p11, %p908_p10 }
  0xde   : > { %p906_p9 = pneg %p905_p7 }
  0xe0   : > { %p911_p13 = pnand %p910_p12, %p906_p9 }
  0xe2   : > { %914 = shalt.err (!%p911_p13)
}
  0xe3   : > { %830 = dma.vmem_to_hbm [thread:$0]  (%p1023_p4), %s679_s7, 16, %s676_s15, %s666_s16  }
  0xe4 PF: > { %p836_p0 = scmp.ge.s32.totalorder %s965_s14, 2  ;;  %s690_s3 = sand.u32 1, %s945_s9  }
  0xe5   : > { %s691_s4 = scalar_lea.sflag [#allocation4], %s690_s3 }
  0xe6   : > { %p833_p1 = pnand %p836_p0, %p1030_p8 }
  0xe8   : > { %p834_p2 = pneg %p833_p1 }
  0xea   : > { %940 = dma.done.wait (%p834_p2), %s691_s4, 16  }
  0xeb   : > { %942 = vsyncadd (%p834_p2), %s691_s4, 4294967280  ;;  %s15_s14 = sadd.s32 1, %s965_s14   ;;  %s1227_s9 = smov %s949_s10 }
  0xec   : > { %p12_p3 = scmp.ge.s32.totalorder %s15_s14, 4   ;;  %s1228_s10 = smov %s953_s11 }
  0xed   : > { %s1229_s11 = smov %s1036_s22  ;;  %s1230_s12 = smov %s961_s13 }
  0xee   : > { %s1231_s13 = smov %s1233_s17  ;;  %14 = sbr.rel (!%p12_p3) target bundleno = 4 (0x4), region = 74 }
  0xf3   :  { %695 = vsyncpa [#allocation4], 1 }
  0xf4   :  { %697 = vsyncpa [#allocation4 + $0x1], 1 }

</bundles_post_ra>
